<compile_context>
chip_gen: v6e
topology: v6e:2x2x1
jax: 0.10.0
libtpu: 0.0.40
codegen_flags: <defaults>
</compile_context>

<pallas_src>
import jax
import jax.numpy as jnp
from jax.experimental import pallas as pl
from jax.experimental.pallas import tpu as pltpu


def make_additive_forward(keep, w1, b1, w2, b2, w3_pt, b3, *,
                          approx_sigmoid=True, tb=None):
    """Precompute lane-dense block-diagonal weights once and return a jitted forward.

    keep : (C, L)    = ~mask (1 where the lag is causal)
    w1   : (C, H, L) conv1 weight (C*H, 1, L) regrouped
    b1   : (C, H)
    w2   : (C, H, H) conv2 weight (C*H, H, 1) regrouped, indexed [c, h_out, h_in]
    b2   : (C, H)
    w3_pt: (V, V*H)  conv3 weight (V, V*H, 1) squeezed
    b3   : (V,)
    """
    f32 = jnp.float32
    C, H, L = w1.shape
    V = w3_pt.shape[0]
    CL, CH = C * L, C * H
    OUT_PAD = 128                      # lane-dense output slab width
    P = max(CH, OUT_PAD)               # packed-bias width

    eye_c = jnp.eye(C, dtype=f32)

    # --- Fold mask into conv1 weight (exact: conv1 is linear over lags). ---
    w1_eff = w1.astype(f32) * keep.astype(f32)[:, None, :]               # (C, H, L)

    # --- Block-diagonal lane-dense weights (built ONCE, outside the hot path). ---
    # W1_bd[c*L + l, c*H + h] = w1_eff[c, h, l]
    w1_bd = jnp.einsum('cd,chl->cldh', eye_c, w1_eff).reshape(CL, CH)
    # W2_bd[c*H + k, c*H + h] = w2[c, h, k]
    w2_bd = jnp.einsum('cd,chk->ckdh', eye_c, w2.astype(f32)).reshape(CH, CH)
    # conv3 (groups=V): out[b,i] = sum_{c in group i} sum_h w3c[c,h] * h2[b,c,h] + b3[i]
    #   with c = i*V + j and w3c[i*V + j, h] = w3_pt[i, j*H + h]
    w3c = w3_pt.astype(f32).reshape(V, V, H).reshape(C, H)                # (C, H)
    gt = (jnp.arange(C)[:, None] // V == jnp.arange(V)[None, :]).astype(f32)  # (C, V)
    w3_full = (w3c[:, :, None] * gt[:, None, :]).reshape(CH, V)          # (C*H, V)
    w3_pad = jnp.zeros((CH, OUT_PAD), f32).at[:, :V].set(w3_full)        # lane-dense

    # --- Single packed bias operand: row 0 = b1, row 1 = b2, row 2 = b3 (padded). ---
    bias = jnp.zeros((3, P), f32)
    bias = bias.at[0, :CH].set(b1.astype(f32).reshape(CH))
    bias = bias.at[1, :CH].set(b2.astype(f32).reshape(CH))
    bias = bias.at[2, :V].set(b3.astype(f32))

    if approx_sigmoid:
        def _sig(z):
            # EUP-friendly sigmoid: exp + approximate reciprocal (separate bundle slot).
            return pl.reciprocal(1.0 + jnp.exp(-z), approx=True)
    else:
        _sig = jax.nn.sigmoid

    def kernel(x_ref, w1_ref, w2_ref, w3_ref, b_ref, o_ref):
        b = b_ref[...]                                                    # (3, P)
        z1 = (jnp.dot(x_ref[...], w1_ref[...], preferred_element_type=jnp.float32)
              + b[0:1, :CH])
        h1 = _sig(z1)
        z2 = (jnp.dot(h1, w2_ref[...], preferred_element_type=jnp.float32)
              + b[1:2, :CH])
        h2 = _sig(z2)
        # Lane-dense (tb, 128) store; only [:, :V] is meaningful.
        o_ref[...] = (jnp.dot(h2, w3_ref[...], preferred_element_type=jnp.float32)
                      + b[2:3, :OUT_PAD])

    @jax.jit
    def forward(x):
        x_flat = x.reshape(-1, CL).astype(f32)          # (B, C*L), lane-dense input
        B = x_flat.shape[0]
        step = B if tb is None else tb                  # single grid step by default
        assert B % step == 0 and (step == B or step % 8 == 0), (B, step)
        out = pl.pallas_call(
            kernel,
            out_shape=jax.ShapeDtypeStruct((B, OUT_PAD), jnp.float32),
            grid_spec=pltpu.PrefetchScalarGridSpec(
                num_scalar_prefetch=0,
                grid=(B // step,),
                in_specs=[
                    pl.BlockSpec((step, CL), lambda i: (i, 0)),       # x (batched)
                    pl.BlockSpec((CL, CH), lambda i: (0, 0)),         # conv1 block-diag W
                    pl.BlockSpec((CH, CH), lambda i: (0, 0)),         # conv2 block-diag W
                    pl.BlockSpec((CH, OUT_PAD), lambda i: (0, 0)),    # conv3 W (lane-padded)
                    pl.BlockSpec((3, P), lambda i: (0, 0)),           # packed biases
                ],
                out_specs=pl.BlockSpec((step, OUT_PAD), lambda i: (i, 0)),
            ),
            compiler_params=pltpu.CompilerParams(
                dimension_semantics=("parallel",)),
        )(x_flat, w1_bd, w2_bd, w3_pad, bias)
        return out[:, :V]

    return forward


if __name__ == "__main__":
    # Small shapes implied by the module: n_var=3, max_lags=4, hidden_dim=16, batch=32.
    V, L, H = 3, 4, 16
    C = V * V
    B = 32

    key = jax.random.PRNGKey(0)
    k_cm, k_x, k_w1, k_b1, k_w2, k_b2, k_w3, k_b3 = jax.random.split(key, 8)

    # Deterministic synthetic causal matrix (binary). mask = ~causal; keep = causal.
    causal = (jax.random.uniform(k_cm, (V, V, L)) > 0.5).astype(jnp.float32)
    keep = causal.reshape(C, L)

    # Input exactly like the PyTorch module receives: (B, V, V, L).
    x = jax.random.normal(k_x, (B, V, V, L), dtype=jnp.float32)

    # Deterministic parameters (same shapes as the PyTorch grouped Conv1d layers, squeezed).
    w1 = 0.3 * jax.random.normal(k_w1, (C, H, L), dtype=jnp.float32)      # conv1: (C*H, 1, L)
    b1 = 0.1 * jax.random.normal(k_b1, (C, H), dtype=jnp.float32)
    w2 = 0.3 * jax.random.normal(k_w2, (C, H, H), dtype=jnp.float32)      # conv2: (C*H, H, 1)
    b2 = 0.1 * jax.random.normal(k_b2, (C, H), dtype=jnp.float32)
    w3_pt = 0.3 * jax.random.normal(k_w3, (V, V * H), dtype=jnp.float32)  # conv3: (V, V*H, 1)
    b3 = 0.1 * jax.random.normal(k_b3, (V,), dtype=jnp.float32)

    # Build forwards once (weight construction hoisted out of the per-call path).
    fwd_exact = make_additive_forward(keep, w1, b1, w2, b2, w3_pt, b3, approx_sigmoid=False)
    fwd_fast = make_additive_forward(keep, w1, b1, w2, b2, w3_pt, b3, approx_sigmoid=True)

    out_exact = jax.block_until_ready(fwd_exact(x))
    out_fast = jax.block_until_ready(fwd_fast(x))

    # Pure-JAX reference mirroring PyTorch grouped-conv semantics exactly.
    xm = x.reshape(B, C, L) * keep[None]
    h1 = jax.nn.sigmoid(jnp.einsum('bcl,chl->bch', xm, w1) + b1[None])
    h2 = jax.nn.sigmoid(jnp.einsum('bck,chk->bch', h1, w2) + b2[None])
    ref = jnp.einsum('bim,im->bi', h2.reshape(B, V, V * H), w3_pt) + b3[None]

    assert out_exact.shape == (B, V), out_exact.shape
    assert out_fast.shape == (B, V), out_fast.shape
    # Exact-sigmoid path matches the reference to float32 precision.
    assert jnp.allclose(out_exact, ref, atol=1e-5, rtol=1e-5), \
        float(jnp.max(jnp.abs(out_exact - ref)))
    # Approx-reciprocal sigmoid trades ~1e-4 absolute error for the EUP fast path.
    assert jnp.allclose(out_fast, ref, atol=5e-3, rtol=5e-3), \
        float(jnp.max(jnp.abs(out_fast - ref)))
    print("KERNEL_OK")
</pallas_src>

<mosaic_0001>
module attributes {stable_mosaic.version = 11 : i64} {
  func.func @kernel(%arg0: i32, %arg1: memref<32x36xf32, #tpu.memory_space<vmem>>, %arg2: memref<36x144xf32, #tpu.memory_space<vmem>>, %arg3: memref<144x144xf32, #tpu.memory_space<vmem>>, %arg4: memref<144x128xf32, #tpu.memory_space<vmem>>, %arg5: memref<3x144xf32, #tpu.memory_space<vmem>>, %arg6: memref<32x128xf32, #tpu.memory_space<vmem>>) attributes {dimension_semantics = [#tpu.dimension_semantics<parallel>], iteration_bounds = array<i64: 1>, scalar_prefetch = 0 : i64, scratch_operands = 0 : i64, tpu.core_type = #tpu.core_type<tc>, window_params = [{transform_indices = @transform_0, window_bounds = array<i64: 32, 36>}, {pipeline_mode = #tpu.pipeline_mode<synchronous>, transform_indices = @transform_1, window_bounds = array<i64: 36, 144>}, {pipeline_mode = #tpu.pipeline_mode<synchronous>, transform_indices = @transform_2, window_bounds = array<i64: 144, 144>}, {pipeline_mode = #tpu.pipeline_mode<synchronous>, transform_indices = @transform_3, window_bounds = array<i64: 144, 128>}, {pipeline_mode = #tpu.pipeline_mode<synchronous>, transform_indices = @transform_4, window_bounds = array<i64: 3, 144>}, {transform_indices = @transform_5, window_bounds = array<i64: 32, 128>}]} {
    %c0 = arith.constant 0 : index
    %c0_0 = arith.constant 0 : index
    %0 = vector.load %arg5[%c0, %c0_0] : memref<3x144xf32, #tpu.memory_space<vmem>>, vector<3x144xf32>
    %c0_1 = arith.constant 0 : index
    %c0_2 = arith.constant 0 : index
    %1 = vector.load %arg1[%c0_1, %c0_2] : memref<32x36xf32, #tpu.memory_space<vmem>>, vector<32x36xf32>
    %c0_3 = arith.constant 0 : index
    %c0_4 = arith.constant 0 : index
    %2 = vector.load %arg2[%c0_3, %c0_4] : memref<36x144xf32, #tpu.memory_space<vmem>>, vector<36x144xf32>
    %cst = arith.constant dense<0.000000e+00> : vector<32x144xf32>
    %3 = tpu.matmul %1, %2, %cst {dimension_numbers = #tpu.dot_dimension_numbers<[1], [0], [0], [1], [0, 0, 1, 1], [], []>} : vector<32x36xf32>, vector<36x144xf32>, vector<32x144xf32> -> vector<32x144xf32>
    %4 = vector.extract_strided_slice %0 {offsets = [0, 0], sizes = [1, 144], strides = [1, 1]} : vector<3x144xf32> to vector<1x144xf32>
    %5 = vector.broadcast %4 : vector<1x144xf32> to vector<32x144xf32>
    %6 = arith.addf %3, %5 : vector<32x144xf32>
    %7 = arith.negf %6 : vector<32x144xf32>
    %8 = math.exp %7 : vector<32x144xf32>
    %cst_5 = arith.constant 1.000000e+00 : f32
    %9 = vector.broadcast %cst_5 : f32 to vector<32x144xf32>
    %10 = arith.addf %9, %8 : vector<32x144xf32>
    %11 = arith.divf %9, %10 : vector<32x144xf32>
    %c0_6 = arith.constant 0 : index
    %c0_7 = arith.constant 0 : index
    %12 = vector.load %arg3[%c0_6, %c0_7] : memref<144x144xf32, #tpu.memory_space<vmem>>, vector<144x144xf32>
    %cst_8 = arith.constant dense<0.000000e+00> : vector<32x144xf32>
    %13 = tpu.matmul %11, %12, %cst_8 {dimension_numbers = #tpu.dot_dimension_numbers<[1], [0], [0], [1], [0, 0, 1, 1], [], []>} : vector<32x144xf32>, vector<144x144xf32>, vector<32x144xf32> -> vector<32x144xf32>
    %14 = vector.extract_strided_slice %0 {offsets = [1, 0], sizes = [1, 144], strides = [1, 1]} : vector<3x144xf32> to vector<1x144xf32>
    %15 = vector.broadcast %14 : vector<1x144xf32> to vector<32x144xf32>
    %16 = arith.addf %13, %15 : vector<32x144xf32>
    %17 = arith.negf %16 : vector<32x144xf32>
    %18 = math.exp %17 : vector<32x144xf32>
    %cst_9 = arith.constant 1.000000e+00 : f32
    %19 = vector.broadcast %cst_9 : f32 to vector<32x144xf32>
    %20 = arith.addf %19, %18 : vector<32x144xf32>
    %21 = arith.divf %19, %20 : vector<32x144xf32>
    %c0_10 = arith.constant 0 : index
    %c0_11 = arith.constant 0 : index
    %22 = vector.load %arg4[%c0_10, %c0_11] : memref<144x128xf32, #tpu.memory_space<vmem>>, vector<144x128xf32>
    %cst_12 = arith.constant dense<0.000000e+00> : vector<32x128xf32>
    %23 = tpu.matmul %21, %22, %cst_12 {dimension_numbers = #tpu.dot_dimension_numbers<[1], [0], [0], [1], [0, 0, 1, 1], [], []>} : vector<32x144xf32>, vector<144x128xf32>, vector<32x128xf32> -> vector<32x128xf32>
    %24 = vector.extract_strided_slice %0 {offsets = [2, 0], sizes = [1, 128], strides = [1, 1]} : vector<3x144xf32> to vector<1x128xf32>
    %25 = vector.broadcast %24 : vector<1x128xf32> to vector<32x128xf32>
    %26 = arith.addf %23, %25 : vector<32x128xf32>
    %c0_13 = arith.constant 0 : index
    %c0_14 = arith.constant 0 : index
    %27 = vector.load %arg6[%c0_13, %c0_14] : memref<32x128xf32, #tpu.memory_space<vmem>>, vector<32x128xf32>
    tpu.vector_store %arg6[%c0_13, %c0_14], %26 {strides = array<i32>} : memref<32x128xf32, #tpu.memory_space<vmem>>, vector<32x128xf32>,
    return
  }
  func.func @transform_0(%arg0: i32) -> (i32, i32) {
    %c0_i32 = arith.constant 0 : i32
    %c0_i32_0 = arith.constant 0 : i32
    return %arg0, %c0_i32 : i32, i32
  }
  func.func @transform_1(%arg0: i32) -> (i32, i32) {
    %c0_i32 = arith.constant 0 : i32
    %c0_i32_0 = arith.constant 0 : i32
    %c0_i32_1 = arith.constant 0 : i32
    return %c0_i32, %c0_i32_0 : i32, i32
  }
  func.func @transform_2(%arg0: i32) -> (i32, i32) {
    %c0_i32 = arith.constant 0 : i32
    %c0_i32_0 = arith.constant 0 : i32
    %c0_i32_1 = arith.constant 0 : i32
    return %c0_i32, %c0_i32_0 : i32, i32
  }
  func.func @transform_3(%arg0: i32) -> (i32, i32) {
    %c0_i32 = arith.constant 0 : i32
    %c0_i32_0 = arith.constant 0 : i32
    %c0_i32_1 = arith.constant 0 : i32
    return %c0_i32, %c0_i32_0 : i32, i32
  }
  func.func @transform_4(%arg0: i32) -> (i32, i32) {
    %c0_i32 = arith.constant 0 : i32
    %c0_i32_0 = arith.constant 0 : i32
    %c0_i32_1 = arith.constant 0 : i32
    return %c0_i32, %c0_i32_0 : i32, i32
  }
  func.func @transform_5(%arg0: i32) -> (i32, i32) {
    %c0_i32 = arith.constant 0 : i32
    %c0_i32_0 = arith.constant 0 : i32
    return %arg0, %c0_i32 : i32, i32
  }
}

</mosaic_0001>

<bundles_post_ra>
// kernel: forward.1
= control target key start
LH: loop header
LB: loop body
LE: loop exit
PB: predicated region body
PF: predicated region fallthrough
CT: control target
= control target key end

     0   :  { %10 = vsyncpa [#allocation3], 0  ;;  %s881_s0 = inlined_call_operand.vmem [shape: f32[32,36], index: 0, kind: input, shape index: {}]   ;;  %s882_s1 = inlined_call_operand.hbm [shape: f32[36,144], index: 1, kind: input, shape index: {}]   ;;  %s883_s2 = inlined_call_operand.hbm [shape: f32[144,144], index: 2, kind: input, shape index: {}]   ;;  %s884_s3 = inlined_call_operand.vmem [shape: f32[144,128], index: 3, kind: input, shape index: {}]   ;;  %s885_s4 = inlined_call_operand.vmem [shape: f32[3,144], index: 4, kind: input, shape index: {}]   ;;  %s886_s5 = inlined_call_operand.vmem [shape: f32[32,128], index: 5, kind: output, shape index: {}]  }
   0x1   :  { %11 = vsyncpa [#allocation5], 0  ;;  %s715_s18 = smov [#allocation2]  }
   0x2   :  { %s19_s19 = sshll.u32 %s715_s18, 4  ;;  %s20_s19 = int_to_ptr.vmem [resolvable:$true] %s19_s19 }
   0x3   :  { %s679_s20 = scalar_lea.vmem %s20_s19, 1280  ;;  %p684_p1 = scmp.lt.s32.totalorder %s20_s19, %s20_s19 }
   0x4   :  { %p680_p0 = scmp.ne.s32.totalorder %s20_s19, %s679_s20  ;;  %p685_p2 = scmp.lt.s32.totalorder %s679_s20, %s679_s20 }
   0x6   :  { %p686_p3 = por %p685_p2, %p684_p1 }
   0x8   :  { %p687_p4 = pnand %p686_p3, %p680_p0 }
   0xa   :  { %690 = shalt.err (!%p687_p4)
}
   0xb   :  { %s716_s21 = smov 256   ;;  %s717_s22 = smov 16  }
   0xc   :  { %25 = dma.hbm_to_vmem [thread:$0]  %s882_s1, 1280, %s20_s19, [#allocation3], %s716_s21, %s716_s21, %s717_s22  }
   0xd   :  { %s718_s25 = smov [#allocation4]  }
   0xe   :  { %s31_s26 = sshll.u32 %s718_s25, 4  ;;  %s32_s26 = int_to_ptr.vmem [resolvable:$true] %s31_s26 }
   0xf   :  { %s699_s27 = scalar_lea.vmem %s32_s26, 4608  ;;  %p704_p6 = scmp.lt.s32.totalorder %s32_s26, %s32_s26 }
  0x10   :  { %p700_p5 = scmp.ne.s32.totalorder %s32_s26, %s699_s27  ;;  %p705_p7 = scmp.lt.s32.totalorder %s699_s27, %s699_s27 }
  0x12   :  { %p706_p8 = por %p705_p7, %p704_p6 }
  0x14   :  { %p707_p9 = pnand %p706_p8, %p700_p5 }
  0x16   :  { %710 = shalt.err (!%p707_p9)
}
  0x17   :  { %37 = dma.hbm_to_vmem [thread:$0]  %s883_s2, 4608, %s32_s26, [#allocation5], %s716_s21, %s716_s21, %s717_s22  }
  0x18   :  { %711 = dma.done.wait [#allocation3], 1280  }
  0x19   :  { %712 = vsyncadd [#allocation3], 4294966016 }
  0x1a   :  { %713 = dma.done.wait [#allocation5], 4608  }
  0x1b   :  { %714 = vsyncadd [#allocation5], 4294962688  ;;  %v719_v0 = vmov 0.0   ;;  %vm95_vm0 = vcmask 1043456   ;;  %v62_v1 = vld [vmem:[#allocation2 + $0x48] sm:$0xf]  ;;  %v64_v51 = vlaneseq }
  0x1c   :  { %166 = vmatprep.mubr.f32.mxu0 %v719_v0  ;;  %v61_v2 = vld [vmem:[#allocation2 + $0x40] sm:$0xf]  ;;  %v60_v3 = vld [vmem:[#allocation2 + $0x38] sm:$0xff]  ;;  %572 = vmatprep.subr.msk.mxu0 %vm95_vm0, %v62_v1  ;;  %v59_v4 = vld [vmem:[#allocation2 + $0x30] sm:$0xff]  ;;  %vm82_vm1 = vcmask 293888   ;;  %vm293_vm2 = vcmask 130048  }
  0x1d   :  { %573 = vmatpush1.msk.msra.mxu0 %vm95_vm0, %v61_v2  ;;  %v58_v5 = vld [vmem:[#allocation2 + $0x28] sm:$0xff]  ;;  %v57_v6 = vld [vmem:[#allocation2 + $0x20] sm:$0xff]  ;;  %v56_v7 = vld [vmem:[#allocation2 + $0x18] sm:$0xff]  ;;  %v773_v52 = vshrl.u32 %v64_v51, 7 }
  0x1e   :  { %126 = vmatprep.subr.mxu0 %v60_v3  ;;  %v55_v8 = vld [vmem:[#allocation2 + $0x10] sm:$0xff]  ;;  %v54_v9 = vld [vmem:[#allocation2 + $0x8] sm:$0xff]  ;;  %v53_v10 = vld [vmem:[#allocation2] sm:$0xff] }
  0x1f   :  { %127 = vmatpush1.msra.mxu0 %v59_v4  ;;  %v49_v11 = vld [vmem:[%s881_s0] sm:$0xff]  ;;  %v50_v12 = vld [vmem:[%s881_s0 + $0x8] sm:$0xff]  ;;  %v51_v13 = vld [vmem:[%s881_s0 + $0x10] sm:$0xff]  ;;  %v66_v53 = vsub.s32 0, %v773_v52  ;;  %v70_v55 = vsub.s32 4, %v773_v52 }
  0x20   :  { %128 = vmatprep.subr.mxu0 %v58_v5  ;;  %v52_v14 = vld [vmem:[%s881_s0 + $0x18] sm:$0xff]  ;;  %v270_v15 = vld [vmem:[#allocation4 + $0xf8] sm:$0xff]  ;;  %v269_v16 = vld [vmem:[#allocation4 + $0xf0] sm:$0xff] }
  0x21   :  { %129 = vmatpush1.msra.mxu0 %v57_v6  ;;  %306 = vmatprep.subr.mxu1 %v270_v15  ;;  %v268_v17 = vld [vmem:[#allocation4 + $0xe8] sm:$0xff]  ;;  %v267_v18 = vld [vmem:[#allocation4 + $0xe0] sm:$0xff]  ;;  %v266_v19 = vld [vmem:[#allocation4 + $0xd8] sm:$0xff] }
  0x22   :  { %130 = vmatprep.subr.mxu0 %v56_v7  ;;  %307 = vmatpush1.msra.mxu1 %v269_v16  ;;  %v265_v20 = vld [vmem:[#allocation4 + $0xd0] sm:$0xff]  ;;  %v264_v21 = vld [vmem:[#allocation4 + $0xc8] sm:$0xff]  ;;  %v263_v22 = vld [vmem:[#allocation4 + $0xc0] sm:$0xff] }
  0x23   :  { %131 = vmatpush1.msra.mxu0 %v55_v8  ;;  %308 = vmatprep.subr.mxu1 %v268_v17  ;;  %v262_v23 = vld [vmem:[#allocation4 + $0xb8] sm:$0xff]  ;;  %v261_v24 = vld [vmem:[#allocation4 + $0xb0] sm:$0xff]  ;;  %v260_v25 = vld [vmem:[#allocation4 + $0xa8] sm:$0xff] }
  0x24   :  { %132 = vmatprep.subr.mxu0 %v54_v9  ;;  %309 = vmatpush1.msra.mxu1 %v267_v18  ;;  %v259_v26 = vld [vmem:[#allocation4 + $0xa0] sm:$0xff]  ;;  %v258_v27 = vld [vmem:[#allocation4 + $0x98] sm:$0xff]  ;;  %v257_v28 = vld [vmem:[#allocation4 + $0x90] sm:$0xff] }
  0x25   :  { %133 = vmatpush1.msra.mxu0 %v53_v10  ;;  %310 = vmatprep.subr.mxu1 %v266_v19  ;;  %v256_v29 = vld [vmem:[#allocation4 + $0x88] sm:$0xff]  ;;  %v255_v30 = vld [vmem:[#allocation4 + $0x80] sm:$0xff]  ;;  %v254_v31 = vld [vmem:[#allocation4 + $0x78] sm:$0xff] }
  0x26   :  { %574 = vmatmul.mubr.msk.f32.vlgmr.msra.gmra.mxu0 %vm82_vm1, %v49_v11  ;;  %477 = vmatprep.subr.mxu0 %v719_v0  ;;  %v253_v32 = vld [vmem:[#allocation4 + $0x70] sm:$0xff]  ;;  %v252_v33 = vld [vmem:[#allocation4 + $0x68] sm:$0xff]  ;;  %v251_v34 = vld [vmem:[#allocation4 + $0x60] sm:$0xff] }
  0x27   :  { %172 = vmatprep.mubr.f32.mxu0 %v719_v0  ;;  %311 = vmatpush1.msra.mxu1 %v265_v20  ;;  %v250_v35 = vld [vmem:[#allocation4 + $0x58] sm:$0xff]  ;;  %v249_v36 = vld [vmem:[#allocation4 + $0x50] sm:$0xff]  ;;  %v248_v37 = vld [vmem:[#allocation4 + $0x48] sm:$0xff] }
  0x28   :  { %312 = vmatprep.subr.mxu1 %v264_v21  ;;  %v247_v38 = vld [vmem:[#allocation4 + $0x40] sm:$0xff]  ;;  %v246_v39 = vld [vmem:[#allocation4 + $0x38] sm:$0xff]  ;;  %v245_v40 = vld [vmem:[#allocation4 + $0x30] sm:$0xff] }
  0x29   :  { %313 = vmatpush1.msra.mxu1 %v263_v22  ;;  %v244_v41 = vld [vmem:[#allocation4 + $0x28] sm:$0xff]  ;;  %v243_v42 = vld [vmem:[#allocation4 + $0x20] sm:$0xff]  ;;  %v242_v43 = vld [vmem:[#allocation4 + $0x18] sm:$0xff] }
  0x2a   :  { %575 = vmatmul.mubr.msk.f32.gmra.mxu0 %vm82_vm1, %v50_v12  ;;  %314 = vmatprep.subr.mxu1 %v262_v23  ;;  %v241_v44 = vld [vmem:[#allocation4 + $0x10] sm:$0xff]  ;;  %v240_v45 = vld [vmem:[#allocation4 + $0x8] sm:$0xff]  ;;  %v239_v46 = vld [vmem:[#allocation4] sm:$0xff] }
  0x2b   :  { %178 = vmatprep.mubr.f32.mxu0 %v719_v0  ;;  %315 = vmatpush1.msra.mxu1 %v261_v24  ;;  %v274_v47 = vld [vmem:[#allocation4 + $0x118] sm:$0xff]  ;;  %v273_v48 = vld [vmem:[#allocation4 + $0x110] sm:$0xff]  ;;  %v272_v49 = vld [vmem:[#allocation4 + $0x108] sm:$0xff] }
  0x2c   :  { %316 = vmatprep.subr.mxu1 %v260_v25  ;;  %v271_v50 = vld [vmem:[#allocation4 + $0x100] sm:$0xff]  ;;  %v779_v54 = vld [vmem:[%s885_s4] sm:$0x77]  ;;  %v452_v51 = vld [vmem:[%s884_s3 + $0x48] sm:$0xff] }
  0x2d   :  { %317 = vmatpush1.msra.mxu1 %v259_v26  ;;  %v67_v56 = vrot.slane %v779_v54, %v66_v53  ;;  %v71_v57 = vrot.slane %v779_v54, %v70_v55  ;;  %v450_v55 = vld [vmem:[%s884_s3 + $0x38] sm:$0xff] }
  0x2e   :  { %576 = vmatmul.mubr.msk.f32.gmra.mxu0 %vm82_vm1, %v51_v13  ;;  %318 = vmatprep.subr.mxu1 %v258_v27 }
  0x2f   :  { %184 = vmatprep.mubr.f32.mxu0 %v719_v0  ;;  %319 = vmatpush1.msra.mxu1 %v257_v28  ;;  %v77_v58 = vrot.slane %v67_v56, %v66_v53  ;;  %v81_v59 = vrot.slane %v71_v57, %v66_v53  ;;  %v451_v53 = vld [vmem:[%s884_s3 + $0x40] sm:$0xff]  ;;  %v449_v56 = vld [vmem:[%s884_s3 + $0x30] sm:$0xff]  ;;  %v448_v57 = vld [vmem:[%s884_s3 + $0x28] sm:$0xff] }
  0x30   :  { %320 = vmatprep.subr.mxu1 %v256_v29 }
  0x31   :  { %321 = vmatpush1.msra.mxu1 %v255_v30 }
  0x32   :  { %577 = vmatmul.mubr.msk.f32.gmra.mxu0 %vm82_vm1, %v52_v14  ;;  %322 = vmatprep.subr.mxu1 %v254_v31 }
  0x33   :  { %323 = vmatpush1.msra.mxu1 %v253_v32 }
  0x34   :  { %324 = vmatprep.subr.mxu1 %v252_v33 }
  0x35   :  { %325 = vmatpush1.msra.mxu1 %v251_v34 }
  0x36   :  { %326 = vmatprep.subr.mxu1 %v250_v35 }
  0x37   :  { %327 = vmatpush1.msra.mxu1 %v249_v36 }
  0x38   :  { %328 = vmatprep.subr.mxu1 %v248_v37 }
  0x39   :  { %329 = vmatpush1.msra.mxu1 %v247_v38 }
  0x3a   :  { %330 = vmatprep.subr.mxu1 %v246_v39 }
  0x3b   :  { %331 = vmatpush1.msra.mxu1 %v245_v40 }
  0x3c   :  { %332 = vmatprep.subr.mxu1 %v244_v41 }
  0x3d   :  { %333 = vmatpush1.msra.mxu1 %v243_v42 }
  0x3e   :  { %334 = vmatprep.subr.mxu1 %v242_v43 }
  0x3f   :  { %335 = vmatpush1.msra.mxu1 %v241_v44 }
  0x40   :  { %336 = vmatprep.subr.mxu1 %v240_v45  ;;  %v458_v45 = vld [vmem:[%s884_s3 + $0x78] sm:$0xff] }
  0x41   :  { %337 = vmatpush1.msra.mxu1 %v239_v46  ;;  %478 = vmatpush1.msra.mxu0 %v458_v45  ;;  %v457_v46 = vld [vmem:[%s884_s3 + $0x70] sm:$0xff] }
  0x42   :  { %366 = vmatprep.subr.mxu1 %v274_v47  ;;  %479 = vmatprep.subr.mxu0 %v719_v0  ;;  %v456_v47 = vld [vmem:[%s884_s3 + $0x68] sm:$0xff] }
  0x43   :  { %367 = vmatpush2.msra.mxu1 %v273_v48  ;;  %480 = vmatpush1.msra.mxu0 %v457_v46  ;;  %v455_v48 = vld [vmem:[%s884_s3 + $0x60] sm:$0xff] }
  0x44   :  { %368 = vmatprep.subr.mxu1 %v272_v49  ;;  %481 = vmatprep.subr.mxu0 %v719_v0  ;;  %v454_v49 = vld [vmem:[%s884_s3 + $0x58] sm:$0xff] }
  0x45   :  { %369 = vmatpush2.msra.mxu1 %v271_v50  ;;  %482 = vmatpush1.msra.mxu0 %v456_v47  ;;  %v453_v50 = vld [vmem:[%s884_s3 + $0x50] sm:$0xff] }
  0x46   :  { %483 = vmatprep.subr.mxu0 %v719_v0 }
  0x47   :  { %484 = vmatpush1.msra.mxu0 %v455_v48 }
  0x48   :  { %485 = vmatprep.subr.mxu0 %v719_v0 }
  0x49   :  { %486 = vmatpush1.msra.mxu0 %v454_v49 }
  0x4a   :  { %487 = vmatprep.subr.mxu0 %v719_v0 }
  0x4b   :  { %488 = vmatpush1.msra.mxu0 %v453_v50 }
  0x4c   :  { %489 = vmatprep.subr.mxu0 %v719_v0 }
  0x4d   :  { %490 = vmatpush1.msra.mxu0 %v452_v51 }
  0x4e   :  { %491 = vmatprep.subr.mxu0 %v719_v0 }
  0x4f   :  { %492 = vmatpush1.msra.mxu0 %v451_v53 }
  0x50   :  { %493 = vmatprep.subr.mxu0 %v719_v0 }
  0x51   :  { %494 = vmatpush1.msra.mxu0 %v450_v55 }
  0x52   :  { %495 = vmatprep.subr.mxu0 %v719_v0 }
  0x53   :  { %496 = vmatpush1.msra.mxu0 %v449_v56 }
  0x54   :  { %497 = vmatprep.subr.mxu0 %v719_v0 }
  0x55   :  { %498 = vmatpush1.msra.mxu0 %v448_v57  ;;  %v463_v57 = vsub.s32 2, %v773_v52 }
  0x56   :  { %499 = vmatprep.subr.mxu0 %v719_v0 }
  0xe6   :  { %v168_v60 = vpop.f32.mrf.mxu0 }
  0xe7   :  { %v169_v61 = vadd.f32 %v168_v60, %v77_v58  ;;  %v445_v60 = vld [vmem:[%s884_s3 + $0x10] sm:$0xff] }
  0xe8   :  { %v170_v62 = vpop.f32.mrf.mxu0 }
  0xe9   :  { %v578_v63 = vmul.f32 -1.442695, %v169_v61  ;;  %v171_v1 = vadd.f32 %v170_v62, %v81_v59  ;;  %v444_v61 = vld [vmem:[%s884_s3 + $0x8] sm:$0xff]  ;;  %v443_v62 = vld [vmem:[%s884_s3] sm:$0xff] }
  0xea   :  { %v174_v2 = vpop.f32.mrf.mxu0 }
  0xeb   :  { %607 = vpow2.f32 %v578_v63  ;;  %v579_v3 = vmul.f32 -1.442695, %v171_v1  ;;  %v175_v4 = vadd.f32 %v174_v2, %v77_v58  ;;  %v460_v63 = vld [vmem:[%s884_s3 + $0x88] sm:$0xff]  ;;  %v459_v1 = vld [vmem:[%s884_s3 + $0x80] sm:$0xff]  ;;  %v277_v2 = vsub.s32 1, %v773_v52 }
  0xec   :  { %v176_v5 = vpop.f32.mrf.mxu0 }
  0xed   :  { %609 = vpow2.f32 %v579_v3  ;;  %v580_v6 = vmul.f32 -1.442695, %v175_v4  ;;  %v177_v7 = vadd.f32 %v176_v5, %v81_v59  ;;  %v281_v3 = vsub.s32 5, %v773_v52 }
  0xee   :  { %v180_v8 = vpop.f32.mrf.mxu0  ;;  %v278_v4 = vrot.slane %v779_v54, %v277_v2 }
  0xef   :  { %611 = vpow2.f32 %v580_v6  ;;  %v581_v9 = vmul.f32 -1.442695, %v177_v7  ;;  %v181_v10 = vadd.f32 %v180_v8, %v77_v58  ;;  %v282_v5 = vrot.slane %v779_v54, %v281_v3 }
  0xf0   :  { %v182_v11 = vpop.f32.mrf.mxu0  ;;  %v288_v6 = vrot.slane %v278_v4, %v277_v2 }
  0xf1   :  { %613 = vpow2.f32 %v581_v9  ;;  %v582_v12 = vmul.f32 -1.442695, %v181_v10  ;;  %v183_v13 = vadd.f32 %v182_v11, %v81_v59  ;;  %v292_v7 = vrot.slane %v282_v5, %v277_v2 }
  0xf2   :  { %v186_v14 = vpop.f32.mrf.mxu0 }
  0xf3   :  { %615 = vpow2.f32 %v582_v12  ;;  %v583_v15 = vmul.f32 -1.442695, %v183_v13  ;;  %v187_v16 = vadd.f32 %v186_v14, %v77_v58  ;;  %v447_v58 = vld [vmem:[%s884_s3 + $0x20] sm:$0xff] }
  0xf4   :  { %v188_v17 = vpop.f32.mrf.mxu0  ;;  %500 = vmatpush1.msra.mxu0 %v447_v58  ;;  %v464_v58 = vrot.slane %v779_v54, %v463_v57 }
  0xf5   :  { %617 = vpow2.f32 %v583_v15  ;;  %v584_v18 = vmul.f32 -1.442695, %v187_v16  ;;  %v189_v19 = vadd.f32 %v188_v17, %v81_v59  ;;  %501 = vmatprep.subr.mxu0 %v719_v0  ;;  %v446_v59 = vld [vmem:[%s884_s3 + $0x18] sm:$0xff] }
  0xf6   :  { %502 = vmatpush1.msra.mxu0 %v446_v59 }
  0xf7   :  { %619 = vpow2.f32 %v584_v18  ;;  %v585_v20 = vmul.f32 -1.442695, %v189_v19  ;;  %503 = vmatprep.subr.mxu0 %v719_v0 }
  0xf8   :  { %v608_v21 = vpop.eup %607  ;;  %504 = vmatpush1.msra.mxu0 %v445_v60 }
  0xf9   :  { %621 = vpow2.f32 %v585_v20  ;;  %v215_v23 = vadd.f32 1.0, %v608_v21  ;;  %505 = vmatprep.subr.mxu0 %v719_v0 }
  0xfa   :  { %v610_v22 = vpop.eup %609  ;;  %506 = vmatpush1.msra.mxu0 %v444_v61 }
  0xfb   :  { %v216_v24 = vadd.f32 1.0, %v610_v22  ;;  %507 = vmatprep.subr.mxu0 %v719_v0 }
  0xfc   :  { %v612_v25 = vpop.eup %611  ;;  %508 = vmatpush1.msra.mxu0 %v443_v62 }
  0xfd   :  { %623 = vrcp.f32 %v216_v24  ;;  %v217_v27 = vadd.f32 1.0, %v612_v25  ;;  %537 = vmatprep.subr.mxu0 %v719_v0 }
  0xfe   :  { %v614_v26 = vpop.eup %613  ;;  %625 = vrcp.f32 %v215_v23  ;;  %538 = vmatpush2.msra.mxu0 %v460_v63 }
  0xff   :  { %v218_v28 = vadd.f32 1.0, %v614_v26  ;;  %539 = vmatprep.subr.mxu0 %v719_v0 }
 0x100   :  { %v616_v29 = vpop.eup %615  ;;  %540 = vmatpush2.msra.mxu0 %v459_v1 }
 0x101   :  { %627 = vrcp.f32 %v218_v28  ;;  %v219_v31 = vadd.f32 1.0, %v616_v29 }
 0x102   :  { %v618_v30 = vpop.eup %617  ;;  %629 = vrcp.f32 %v217_v27 }
 0x103   :  { %v220_v32 = vadd.f32 1.0, %v618_v30 }
 0x104   :  { %v620_v33 = vpop.eup %619 }
 0x105   :  { %631 = vrcp.f32 %v220_v32  ;;  %v221_v35 = vadd.f32 1.0, %v620_v33 }
 0x106   :  { %v622_v34 = vpop.eup %621  ;;  %633 = vrcp.f32 %v219_v31 }
 0x107   :  { %v222_v36 = vadd.f32 1.0, %v622_v34 }
 0x109   :  { %635 = vrcp.f32 %v222_v36 }
 0x10a   :  { %v624_v37 = vpop.eup %623  ;;  %637 = vrcp.f32 %v221_v35 }
 0x10b   :  { %v626_v38 = vpop.eup %625  ;;  %586 = vmatprep.mubr.msk.f32.mxu1 %vm293_vm2, %v624_v37 }
 0x10c   :  { %371 = vmatmul.mubr.f32.vlgmr.msra.gmra.mxu1 %v626_v38 }
 0x10e   :  { %v628_v39 = vpop.eup %627 }
 0x10f   :  { %v630_v40 = vpop.eup %629  ;;  %587 = vmatprep.mubr.msk.f32.mxu1 %vm293_vm2, %v628_v39 }
 0x110   :  { %377 = vmatmul.mubr.f32.gmra.mxu1 %v630_v40 }
 0x112   :  { %v632_v41 = vpop.eup %631 }
 0x113   :  { %v634_v42 = vpop.eup %633  ;;  %588 = vmatprep.mubr.msk.f32.mxu1 %vm293_vm2, %v632_v41 }
 0x114   :  { %383 = vmatmul.mubr.f32.gmra.mxu1 %v634_v42 }
 0x116   :  { %v636_v43 = vpop.eup %635 }
 0x117   :  { %v638_v44 = vpop.eup %637  ;;  %589 = vmatprep.mubr.msk.f32.mxu1 %vm293_vm2, %v636_v43 }
 0x118   :  { %389 = vmatmul.mubr.f32.gmra.mxu1 %v638_v44 }
 0x1cc   :  { %v372_v8 = vpop.f32.mrf.mxu1 }
 0x1cd   :  { %v373_v9 = vadd.f32 %v372_v8, %v288_v6 }
 0x1ce   :  { %v374_v10 = vpop.f32.mrf.mxu1 }
 0x1cf   :  { %v590_v11 = vmul.f32 -1.442695, %v373_v9  ;;  %v375_v12 = vadd.f32 %v374_v10, %v292_v7 }
 0x1d0   :  { %v378_v13 = vpop.f32.mrf.mxu1 }
 0x1d1   :  { %639 = vpow2.f32 %v590_v11  ;;  %v591_v14 = vmul.f32 -1.442695, %v375_v12  ;;  %v379_v0 = vadd.f32 %v378_v13, %v288_v6 }
 0x1d2   :  { %v380_v15 = vpop.f32.mrf.mxu1 }
 0x1d3   :  { %641 = vpow2.f32 %v591_v14  ;;  %v592_v16 = vmul.f32 -1.442695, %v379_v0  ;;  %v381_v17 = vadd.f32 %v380_v15, %v292_v7 }
 0x1d4   :  { %v384_v18 = vpop.f32.mrf.mxu1 }
 0x1d5   :  { %643 = vpow2.f32 %v592_v16  ;;  %v593_v19 = vmul.f32 -1.442695, %v381_v17  ;;  %v385_v20 = vadd.f32 %v384_v18, %v288_v6 }
 0x1d6   :  { %v386_v21 = vpop.f32.mrf.mxu1 }
 0x1d7   :  { %645 = vpow2.f32 %v593_v19  ;;  %v594_v22 = vmul.f32 -1.442695, %v385_v20  ;;  %v387_v23 = vadd.f32 %v386_v21, %v292_v7 }
 0x1d8   :  { %v390_v24 = vpop.f32.mrf.mxu1 }
 0x1d9   :  { %647 = vpow2.f32 %v594_v22  ;;  %v595_v25 = vmul.f32 -1.442695, %v387_v23  ;;  %v391_v26 = vadd.f32 %v390_v24, %v288_v6 }
 0x1da   :  { %v392_v27 = vpop.f32.mrf.mxu1 }
 0x1db   :  { %649 = vpow2.f32 %v595_v25  ;;  %v596_v28 = vmul.f32 -1.442695, %v391_v26  ;;  %v393_v29 = vadd.f32 %v392_v27, %v292_v7 }
 0x1dd   :  { %651 = vpow2.f32 %v596_v28  ;;  %v597_v30 = vmul.f32 -1.442695, %v393_v29 }
 0x1de   :  { %v640_v31 = vpop.eup %639 }
 0x1df   :  { %653 = vpow2.f32 %v597_v30  ;;  %v419_v33 = vadd.f32 1.0, %v640_v31 }
 0x1e0   :  { %v642_v32 = vpop.eup %641 }
 0x1e1   :  { %v420_v34 = vadd.f32 1.0, %v642_v32 }
 0x1e2   :  { %v644_v35 = vpop.eup %643 }
 0x1e3   :  { %655 = vrcp.f32 %v420_v34  ;;  %v421_v37 = vadd.f32 1.0, %v644_v35 }
 0x1e4   :  { %v646_v36 = vpop.eup %645  ;;  %657 = vrcp.f32 %v419_v33 }
 0x1e5   :  { %v422_v38 = vadd.f32 1.0, %v646_v36 }
 0x1e6   :  { %v648_v39 = vpop.eup %647 }
 0x1e7   :  { %659 = vrcp.f32 %v422_v38  ;;  %v423_v41 = vadd.f32 1.0, %v648_v39 }
 0x1e8   :  { %v650_v40 = vpop.eup %649  ;;  %661 = vrcp.f32 %v421_v37 }
 0x1e9   :  { %v424_v42 = vadd.f32 1.0, %v650_v40 }
 0x1ea   :  { %v652_v43 = vpop.eup %651 }
 0x1eb   :  { %663 = vrcp.f32 %v424_v42  ;;  %v425_v45 = vadd.f32 1.0, %v652_v43 }
 0x1ec   :  { %v654_v44 = vpop.eup %653  ;;  %665 = vrcp.f32 %v423_v41 }
 0x1ed   :  { %v426_v46 = vadd.f32 1.0, %v654_v44 }
 0x1ef   :  { %667 = vrcp.f32 %v426_v46 }
 0x1f0   :  { %v656_v47 = vpop.eup %655  ;;  %669 = vrcp.f32 %v425_v45 }
 0x1f1   :  { %v658_v48 = vpop.eup %657  ;;  %598 = vmatprep.mubr.msk.f32.mxu0 %vm293_vm2, %v656_v47 }
 0x1f2   :  { %542 = vmatmul.mubr.f32.vlgmr.msra.gmra.mxu0 %v658_v48 }
 0x1f4   :  { %v660_v49 = vpop.eup %659 }
 0x1f5   :  { %v662_v50 = vpop.eup %661  ;;  %599 = vmatprep.mubr.msk.f32.mxu0 %vm293_vm2, %v660_v49 }
 0x1f6   :  { %547 = vmatmul.mubr.f32.gmra.mxu0 %v662_v50 }
 0x1f8   :  { %v664_v51 = vpop.eup %663 }
 0x1f9   :  { %v666_v53 = vpop.eup %665  ;;  %600 = vmatprep.mubr.msk.f32.mxu0 %vm293_vm2, %v664_v51 }
 0x1fa   :  { %552 = vmatmul.mubr.f32.gmra.mxu0 %v666_v53 }
 0x1fc   :  { %v668_v55 = vpop.eup %667 }
 0x1fd   :  { %v670_v56 = vpop.eup %669  ;;  %601 = vmatprep.mubr.msk.f32.mxu0 %vm293_vm2, %v668_v55 }
 0x1fe   :  { %557 = vmatmul.mubr.f32.gmra.mxu0 %v670_v56 }
 0x2b2   :  { %v543_v59 = vpop.f32.mrf.mxu0 }
 0x2b3   :  { %v544_v60 = vadd.f32 %v543_v59, %v464_v58 }
 0x2b4   :  { %v545_v61 = vpop.f32.mrf.mxu0 }
 0x2b5   :  { %562 = vst [vmem:[%s886_s5] sm:$0xff] %v544_v60 }
 0x2b6   :  { %v548_v62 = vpop.f32.mrf.mxu0 }
 0x2b7   :  { %v549_v63 = vadd.f32 %v548_v62, %v464_v58 }
 0x2b8   :  { %v550_v1 = vpop.f32.mrf.mxu0 }
 0x2b9   :  { %563 = vst [vmem:[%s886_s5 + $0x8] sm:$0xff] %v549_v63 }
 0x2ba   :  { %v553_v2 = vpop.f32.mrf.mxu0 }
 0x2bb   :  { %v554_v3 = vadd.f32 %v553_v2, %v464_v58 }
 0x2bc   :  { %v555_v4 = vpop.f32.mrf.mxu0 }
 0x2bd   :  { %564 = vst [vmem:[%s886_s5 + $0x10] sm:$0xff] %v554_v3 }
 0x2be   :  { %v558_v52 = vpop.f32.mrf.mxu0 }
 0x2bf   :  { %v559_v54 = vadd.f32 %v558_v52, %v464_v58 }
 0x2c0   :  { %v560_v5 = vpop.f32.mrf.mxu0 }
 0x2c1   :  { %565 = vst [vmem:[%s886_s5 + $0x18] sm:$0xff] %v559_v54 }
 0x2c2   :  { %570 = vsyncpa [#allocation3], 1 }
 0x2c3   :  { %571 = vsyncpa [#allocation5], 1 }

</bundles_post_ra>
